<compile_context>
chip_gen: v5e
topology: v5e:2x2
jax: 0.10.0
libtpu: 0.0.40
codegen_flags: <defaults>
</compile_context>

<pallas_src>
import functools

import jax
import jax.numpy as jnp
from jax import lax
from jax.experimental import pallas as pl
from jax.experimental.pallas import tpu as pltpu

TEMPERATURE = 0.07
EPS = 1e-8


def _supcon_kernel(rows_ref, colsT_ref, lab_a_ref, lab_c_ref, out_ref,
                   se_ref, sp_ref, cnt_ref):
    """One grid step handles a (TILE_B, TILE_N) strip of the similarity matrix.

    rows_ref  : (TILE_B, D)   normalized anchor rows, pre-scaled by 1/T
    colsT_ref : (D, TILE_N)   normalized features, pre-transposed
    lab_a_ref : (TILE_B, 1)   int32 labels of this row block (anchors)
    lab_c_ref : (1, TILE_N)   int32 labels of this column block
    out_ref   : (TILE_B, 1)   f32 mean_log_prob_pos (written at last column step)
    se_ref, sp_ref, cnt_ref : (TILE_B, 1) f32 VMEM accumulators
    """
    tile_b = rows_ref.shape[0]
    tile_n = colsT_ref.shape[1]
    j = pl.program_id(1)

    @pl.when(j == 0)
    def _():
        se_ref[...] = jnp.zeros_like(se_ref)
        sp_ref[...] = jnp.zeros_like(sp_ref)
        cnt_ref[...] = jnp.zeros_like(cnt_ref)

    # (TILE_B, TILE_N) strip of sim = (f @ f.T) / T on the MXU (f32 accumulate).
    # The 1/T scale is folded into rows_ref (wrapper, f32) and the RHS is
    # already (D, TILE_N), so this is a plain transpose-free matmul.
    sim = jnp.dot(rows_ref[...], colsT_ref[...],
                  preferred_element_type=jnp.float32)

    lab_a = lab_a_ref[...]                     # (TILE_B, 1)
    lab_c = lab_c_ref[...]                     # (1, TILE_N)
    a_closed = lab_a != -1
    c_closed = lab_c != -1

    # Supervised positive mask (diagonal included, exactly as in the PyTorch code).
    pos = jnp.logical_and(lab_a == lab_c,
                          jnp.logical_and(a_closed, c_closed))   # (TILE_B, TILE_N)
    sp_ref[...] += jnp.sum(jnp.where(pos, sim, 0.0), axis=1, keepdims=True)
    cnt_ref[...] += jnp.sum(pos.astype(jnp.float32), axis=1, keepdims=True)

    # Folded soft-negative reweighting:
    #   exp(sim) * (1 - open + open*(1 - sim)) == exp(sim) * where(open, 1 - sim, 1)
    is_open = jnp.logical_or(jnp.logical_not(a_closed),
                             jnp.logical_not(c_closed))
    contrib = jnp.exp(sim) * jnp.where(is_open, 1.0 - sim, 1.0)

    # Self-exclusion only matters on tiles that straddle the diagonal.
    row_start = pl.multiple_of(pl.program_id(0) * tile_b, tile_b)
    col_start = pl.multiple_of(j * tile_n, tile_n)
    has_diag = jnp.logical_and(row_start < col_start + tile_n,
                               col_start < row_start + tile_b)

    @pl.when(has_diag)
    def _():
        gl_row = lax.broadcasted_iota(jnp.int32, sim.shape, 0) + row_start
        gl_col = lax.broadcasted_iota(jnp.int32, sim.shape, 1) + col_start
        se_ref[...] += jnp.sum(jnp.where(gl_row != gl_col, contrib, 0.0),
                               axis=1, keepdims=True)

    @pl.when(jnp.logical_not(has_diag))
    def _():
        se_ref[...] += jnp.sum(contrib, axis=1, keepdims=True)

    @pl.when(j == pl.num_programs(1) - 1)
    def _():
        # mean_log_prob_pos = sum(pos*(sim - logZ)) / (n_pos + eps)
        #                   = (sum_pos_sim - n_pos*logZ) / (n_pos + eps)
        log_z = jnp.log(se_ref[...] + EPS)     # EPS placement matches the module
        out_ref[...] = ((sp_ref[...] - cnt_ref[...] * log_z) /
                        (cnt_ref[...] + EPS))


def _pick_tile_b(batch, max_tile):
    """Largest row tile <= max_tile (multiple of 8) dividing batch, else batch."""
    if batch <= max_tile or batch % 8 != 0:
        return batch
    t = (max_tile // 8) * 8
    while batch % t != 0:
        t -= 8
    return t


def _pick_tile_n(batch, max_tile):
    """Column (lane) tile: 256/128-aligned divisor of batch, else full batch."""
    if batch <= max_tile or batch % 128 != 0:
        return batch
    for align in (256, 128):
        t = (max_tile // align) * align
        while t >= align:
            if batch % t == 0:
                return t
            t -= align
    return batch


@functools.partial(jax.jit, static_argnames=("max_tile_b", "max_tile_n"))
def supcon_loss_soft_negative(features, labels, *, max_tile_b=256, max_tile_n=512):
    """features: [B, D] float; labels: [B] int (open-set samples labelled -1)."""
    B, D = features.shape
    tile_b = _pick_tile_b(B, max_tile_b)
    tile_n = _pick_tile_n(B, max_tile_n)
    n_rb = B // tile_b
    n_cb = B // tile_n

    # ---- hoisted preprocessing (one fused XLA pass over B x D) -------------
    f32 = features.astype(jnp.float32)
    ss = jnp.sum(f32 * f32, axis=1, keepdims=True)
    f_n = f32 * lax.rsqrt(jnp.maximum(ss, 1e-24))     # == x / max(||x||, 1e-12)

    mm_dtype = features.dtype                          # bf16 stays bf16, f32 stays f32
    rows = (f_n * (1.0 / TEMPERATURE)).astype(mm_dtype)   # (B, D), 1/T folded in (f32)
    cols_t = jnp.transpose(f_n.astype(mm_dtype))          # (D, B), transpose-free matmul

    lab_a = labels.reshape(B, 1).astype(jnp.int32)
    lab_c = labels.reshape(1, B).astype(jnp.int32)

    # ---- explicit VMEM budget (double-buffered blocks + f32 strip temps) ----
    feat_bytes = jnp.dtype(mm_dtype).itemsize
    est = (2 * tile_b * D * feat_bytes          # row blocks
           + 2 * D * tile_n * feat_bytes        # column blocks
           + 2 * 8 * (tile_b + tile_n) * 4      # label blocks (sublane-padded)
           + 5 * tile_b * 128 * 4               # output + scratch (lane-padded)
           + 6 * tile_b * tile_n * 4)           # per-strip f32 temporaries
    vmem_limit = min(max(int(est * 1.5), 32 * 1024 * 1024), 48 * 1024 * 1024)

    grid_spec = pltpu.PrefetchScalarGridSpec(
        num_scalar_prefetch=0,
        grid=(n_rb, n_cb),
        in_specs=[
            pl.BlockSpec((tile_b, D), lambda i, j: (i, 0)),   # anchor rows (scaled)
            pl.BlockSpec((D, tile_n), lambda i, j: (0, j)),   # column strip (D, TILE_N)
            pl.BlockSpec((tile_b, 1), lambda i, j: (i, 0)),   # anchor labels
            pl.BlockSpec((1, tile_n), lambda i, j: (0, j)),   # column labels
        ],
        out_specs=pl.BlockSpec((tile_b, 1), lambda i, j: (i, 0)),
        scratch_shapes=[pltpu.VMEM((tile_b, 1), jnp.float32)] * 3,
    )

    mean_log_prob_pos = pl.pallas_call(
        _supcon_kernel,
        out_shape=jax.ShapeDtypeStruct((B, 1), jnp.float32),
        grid_spec=grid_spec,
        compiler_params=pltpu.CompilerParams(
            dimension_semantics=("parallel", "arbitrary"),
            vmem_limit_bytes=vmem_limit,
        ),
    )(rows, cols_t, lab_a, lab_c)

    return -jnp.sum(mean_log_prob_pos) / B


def _reference(features, labels):
    """Pure-JAX mirror of the PyTorch SupConLoss_SoftNegative forward."""
    f = features.astype(jnp.float32)
    f = f / jnp.maximum(jnp.sqrt(jnp.sum(f * f, axis=1, keepdims=True)), 1e-12)
    sim = (f @ f.T) / TEMPERATURE
    lab = labels.reshape(-1, 1)
    valid = (lab != -1).astype(jnp.float32)
    mask = (lab == lab.T).astype(jnp.float32) * (valid @ valid.T)
    B = f.shape[0]
    logits_mask = 1.0 - jnp.eye(B, dtype=jnp.float32)
    exp_sim = jnp.exp(sim) * logits_mask
    open_r = (lab == -1).astype(jnp.float32)
    open_c = (lab.T == -1).astype(jnp.float32)
    open_mask = jnp.clip(open_r + open_c, 0.0, 1.0) * logits_mask
    weights = 1.0 - sim
    exp_sim = exp_sim * (1.0 - open_mask + open_mask * weights)
    log_prob = sim - jnp.log(exp_sim.sum(1, keepdims=True) + EPS)
    mlpp = (mask * log_prob).sum(1) / (mask.sum(1) + EPS)
    return -mlpp.mean()


if __name__ == "__main__":
    key = jax.random.PRNGKey(0)
    B, D = 16, 32
    labels = jnp.array([0, 1, 0, -1, 1, 2, -1, 2,
                        3, 0, 3, -1, 1, 2, 4, 4], dtype=jnp.int32)

    # Well-conditioned features: near-orthogonal rows keep |cos| << TEMPERATURE
    # so the soft-negative factor (1 - sim) stays positive and exp_sim row sums
    # are > 0.  (Highly-correlated random inputs make the original PyTorch
    # module itself return NaN — that behaviour is preserved, not tested.)
    base = jnp.eye(B, D, dtype=jnp.float32)
    noise = 0.01 * jax.random.normal(key, (B, D), dtype=jnp.float32)
    features = base + noise

    # max_tile_b=8 -> two row blocks, exercising the tiled/accumulating path.
    loss = supcon_loss_soft_negative(features, labels, max_tile_b=8)
    jax.block_until_ready(loss)

    ref = _reference(features, labels)
    assert bool(jnp.isfinite(loss)), ("kernel loss not finite", loss)
    assert bool(jnp.isfinite(ref)), ("reference loss not finite", ref)
    assert jnp.allclose(loss, ref, rtol=1e-4, atol=1e-4), (loss, ref)
    print("KERNEL_OK")
</pallas_src>

<mosaic_0001>
module attributes {stable_mosaic.version = 11 : i64} {
  func.func @_supcon_kernel(%arg0: i32, %arg1: i32, %arg2: memref<8x32xf32, #tpu.memory_space<vmem>>, %arg3: memref<32x16xf32, #tpu.memory_space<vmem>>, %arg4: memref<8x1xi32, #tpu.memory_space<vmem>>, %arg5: memref<1x16xi32, #tpu.memory_space<vmem>>, %arg6: memref<8x1xf32, #tpu.memory_space<vmem>>, %arg7: memref<8x1xf32, #tpu.memory_space<vmem>>, %arg8: memref<8x1xf32, #tpu.memory_space<vmem>>, %arg9: memref<8x1xf32, #tpu.memory_space<vmem>>) attributes {dimension_semantics = [#tpu.dimension_semantics<parallel>, #tpu.dimension_semantics<arbitrary>], iteration_bounds = array<i64: 2, 1>, scalar_prefetch = 0 : i64, scratch_operands = 3 : i64, tpu.core_type = #tpu.core_type<tc>, window_params = [{transform_indices = @transform_0, window_bounds = array<i64: 8, 32>}, {transform_indices = @transform_1, window_bounds = array<i64: 32, 16>}, {transform_indices = @transform_2, window_bounds = array<i64: 8, 1>}, {transform_indices = @transform_3, window_bounds = array<i64: 1, 16>}, {transform_indices = @transform_4, window_bounds = array<i64: 8, 1>}]} {
    %c0_i32 = arith.constant 0 : i32
    %0 = arith.cmpi eq, %arg1, %c0_i32 : i32
    %1 = arith.extui %0 : i1 to i32
    %c0_i32_0 = arith.constant 0 : i32
    %2 = arith.cmpi ne, %1, %c0_i32_0 : i32
    scf.if %2 {
      %cst_30 = arith.constant 0.000000e+00 : f32
      %61 = vector.broadcast %cst_30 : f32 to vector<8x1xf32>
      %c0_31 = arith.constant 0 : index
      %c0_32 = arith.constant 0 : index
      %62 = vector.load %arg7[%c0_31, %c0_32] : memref<8x1xf32, #tpu.memory_space<vmem>>, vector<8x1xf32>
      tpu.vector_store %arg7[%c0_31, %c0_32], %61 {strides = array<i32>} : memref<8x1xf32, #tpu.memory_space<vmem>>, vector<8x1xf32>,
      %cst_33 = arith.constant 0.000000e+00 : f32
      %63 = vector.broadcast %cst_33 : f32 to vector<8x1xf32>
      %c0_34 = arith.constant 0 : index
      %c0_35 = arith.constant 0 : index
      %64 = vector.load %arg8[%c0_34, %c0_35] : memref<8x1xf32, #tpu.memory_space<vmem>>, vector<8x1xf32>
      tpu.vector_store %arg8[%c0_34, %c0_35], %63 {strides = array<i32>} : memref<8x1xf32, #tpu.memory_space<vmem>>, vector<8x1xf32>,
      %cst_36 = arith.constant 0.000000e+00 : f32
      %65 = vector.broadcast %cst_36 : f32 to vector<8x1xf32>
      %c0_37 = arith.constant 0 : index
      %c0_38 = arith.constant 0 : index
      %66 = vector.load %arg9[%c0_37, %c0_38] : memref<8x1xf32, #tpu.memory_space<vmem>>, vector<8x1xf32>
      tpu.vector_store %arg9[%c0_37, %c0_38], %65 {strides = array<i32>} : memref<8x1xf32, #tpu.memory_space<vmem>>, vector<8x1xf32>,
    } else {
    }
    %c0 = arith.constant 0 : index
    %c0_1 = arith.constant 0 : index
    %3 = vector.load %arg2[%c0, %c0_1] : memref<8x32xf32, #tpu.memory_space<vmem>>, vector<8x32xf32>
    %c0_2 = arith.constant 0 : index
    %c0_3 = arith.constant 0 : index
    %4 = vector.load %arg3[%c0_2, %c0_3] : memref<32x16xf32, #tpu.memory_space<vmem>>, vector<32x16xf32>
    %cst = arith.constant dense<0.000000e+00> : vector<8x16xf32>
    %5 = tpu.matmul %3, %4, %cst {dimension_numbers = #tpu.dot_dimension_numbers<[1], [0], [0], [1], [0, 0, 1, 1], [], []>} : vector<8x32xf32>, vector<32x16xf32>, vector<8x16xf32> -> vector<8x16xf32>
    %c0_4 = arith.constant 0 : index
    %c0_5 = arith.constant 0 : index
    %6 = vector.load %arg4[%c0_4, %c0_5] : memref<8x1xi32, #tpu.memory_space<vmem>>, vector<8x1xi32>
    %c0_6 = arith.constant 0 : index
    %c0_7 = arith.constant 0 : index
    %7 = vector.load %arg5[%c0_6, %c0_7] : memref<1x16xi32, #tpu.memory_space<vmem>>, vector<1x16xi32>
    %c-1_i32 = arith.constant -1 : i32
    %8 = vector.broadcast %c-1_i32 : i32 to vector<8x1xi32>
    %9 = arith.cmpi ne, %6, %8 : vector<8x1xi32>
    %c-1_i32_8 = arith.constant -1 : i32
    %10 = vector.broadcast %c-1_i32_8 : i32 to vector<1x16xi32>
    %11 = arith.cmpi ne, %7, %10 : vector<1x16xi32>
    %12 = vector.broadcast %6 : vector<8x1xi32> to vector<8x16xi32>
    %13 = vector.broadcast %7 : vector<1x16xi32> to vector<8x16xi32>
    %14 = arith.cmpi eq, %12, %13 : vector<8x16xi32>
    %15 = vector.broadcast %9 : vector<8x1xi1> to vector<8x16xi1>
    %16 = vector.broadcast %11 : vector<1x16xi1> to vector<8x16xi1>
    %17 = arith.andi %15, %16 : vector<8x16xi1>
    %18 = arith.andi %14, %17 : vector<8x16xi1>
    %c0_9 = arith.constant 0 : index
    %c0_10 = arith.constant 0 : index
    %19 = vector.load %arg8[%c0_9, %c0_10] : memref<8x1xf32, #tpu.memory_space<vmem>>, vector<8x1xf32>
    %cst_11 = arith.constant 0.000000e+00 : f32
    %20 = vector.broadcast %cst_11 : f32 to vector<8x16xf32>
    %21 = arith.select %18, %5, %20 : vector<8x16xi1>, vector<8x16xf32>
    %cst_12 = arith.constant dense<0.000000e+00> : vector<8xf32>
    %22 = vector.multi_reduction <add>, %21, %cst_12 [1] : vector<8x16xf32> to vector<8xf32>
    %23 = vector.shape_cast %22 : vector<8xf32> to vector<8x1xf32>
    %24 = arith.addf %19, %23 : vector<8x1xf32>
    %c0_13 = arith.constant 0 : index
    %c0_14 = arith.constant 0 : index
    %25 = vector.load %arg8[%c0_13, %c0_14] : memref<8x1xf32, #tpu.memory_space<vmem>>, vector<8x1xf32>
    tpu.vector_store %arg8[%c0_13, %c0_14], %24 {strides = array<i32>} : memref<8x1xf32, #tpu.memory_space<vmem>>, vector<8x1xf32>,
    %c0_15 = arith.constant 0 : index
    %c0_16 = arith.constant 0 : index
    %26 = vector.load %arg9[%c0_15, %c0_16] : memref<8x1xf32, #tpu.memory_space<vmem>>, vector<8x1xf32>
    %27 = arith.extui %18 : vector<8x16xi1> to vector<8x16xi32>
    %28 = arith.sitofp %27 : vector<8x16xi32> to vector<8x16xf32>
    %cst_17 = arith.constant dense<0.000000e+00> : vector<8xf32>
    %29 = vector.multi_reduction <add>, %28, %cst_17 [1] : vector<8x16xf32> to vector<8xf32>
    %30 = vector.shape_cast %29 : vector<8xf32> to vector<8x1xf32>
    %31 = arith.addf %26, %30 : vector<8x1xf32>
    %c0_18 = arith.constant 0 : index
    %c0_19 = arith.constant 0 : index
    %32 = vector.load %arg9[%c0_18, %c0_19] : memref<8x1xf32, #tpu.memory_space<vmem>>, vector<8x1xf32>
    tpu.vector_store %arg9[%c0_18, %c0_19], %31 {strides = array<i32>} : memref<8x1xf32, #tpu.memory_space<vmem>>, vector<8x1xf32>,
    %cst_20 = arith.constant dense<true> : vector<8x1xi1>
    %33 = arith.xori %9, %cst_20 : vector<8x1xi1>
    %cst_21 = arith.constant dense<true> : vector<1x16xi1>
    %34 = arith.xori %11, %cst_21 : vector<1x16xi1>
    %35 = vector.broadcast %33 : vector<8x1xi1> to vector<8x16xi1>
    %36 = vector.broadcast %34 : vector<1x16xi1> to vector<8x16xi1>
    %37 = arith.ori %35, %36 : vector<8x16xi1>
    %38 = math.exp %5 : vector<8x16xf32>
    %cst_22 = arith.constant 1.000000e+00 : f32
    %39 = vector.broadcast %cst_22 : f32 to vector<8x16xf32>
    %40 = arith.subf %39, %5 : vector<8x16xf32>
    %cst_23 = arith.constant 1.000000e+00 : f32
    %41 = vector.broadcast %cst_23 : f32 to vector<8x16xf32>
    %42 = arith.select %37, %40, %41 : vector<8x16xi1>, vector<8x16xf32>
    %43 = arith.mulf %38, %42 : vector<8x16xf32>
    %c8_i32 = arith.constant 8 : i32
    %44 = arith.muli %arg0, %c8_i32 : i32
    %45 = tpu.assume_multiple %44, 8 : i32
    %c16_i32 = arith.constant 16 : i32
    %46 = arith.muli %arg1, %c16_i32 : i32
    %47 = tpu.assume_multiple %46, 16 : i32
    %c16_i32_24 = arith.constant 16 : i32
    %48 = arith.addi %47, %c16_i32_24 : i32
    %49 = arith.cmpi slt, %45, %48 : i32
    %c8_i32_25 = arith.constant 8 : i32
    %50 = arith.addi %45, %c8_i32_25 : i32
    %51 = arith.cmpi slt, %47, %50 : i32
    %52 = arith.andi %49, %51 : i1
    %53 = arith.extui %52 : i1 to i32
    %c0_i32_26 = arith.constant 0 : i32
    %54 = arith.cmpi ne, %53, %c0_i32_26 : i32
    scf.if %54 {
      %61 = tpu.iota {dimensions = array<i32: 0>} : vector<8x16xi32>
      %62 = vector.broadcast %45 : i32 to vector<8x16xi32>
      %63 = arith.addi %61, %62 : vector<8x16xi32>
      %64 = tpu.iota {dimensions = array<i32: 1>} : vector<8x16xi32>
      %65 = vector.broadcast %47 : i32 to vector<8x16xi32>
      %66 = arith.addi %64, %65 : vector<8x16xi32>
      %c0_30 = arith.constant 0 : index
      %c0_31 = arith.constant 0 : index
      %67 = vector.load %arg7[%c0_30, %c0_31] : memref<8x1xf32, #tpu.memory_space<vmem>>, vector<8x1xf32>
      %68 = arith.cmpi ne, %63, %66 : vector<8x16xi32>
      %cst_32 = arith.constant 0.000000e+00 : f32
      %69 = vector.broadcast %cst_32 : f32 to vector<8x16xf32>
      %70 = arith.select %68, %43, %69 : vector<8x16xi1>, vector<8x16xf32>
      %cst_33 = arith.constant dense<0.000000e+00> : vector<8xf32>
      %71 = vector.multi_reduction <add>, %70, %cst_33 [1] : vector<8x16xf32> to vector<8xf32>
      %72 = vector.shape_cast %71 : vector<8xf32> to vector<8x1xf32>
      %73 = arith.addf %67, %72 : vector<8x1xf32>
      %c0_34 = arith.constant 0 : index
      %c0_35 = arith.constant 0 : index
      %74 = vector.load %arg7[%c0_34, %c0_35] : memref<8x1xf32, #tpu.memory_space<vmem>>, vector<8x1xf32>
      tpu.vector_store %arg7[%c0_34, %c0_35], %73 {strides = array<i32>} : memref<8x1xf32, #tpu.memory_space<vmem>>, vector<8x1xf32>,
    } else {
    }
    %true = arith.constant true
    %55 = arith.xori %52, %true : i1
    %56 = arith.extui %55 : i1 to i32
    %c0_i32_27 = arith.constant 0 : i32
    %57 = arith.cmpi ne, %56, %c0_i32_27 : i32
    scf.if %57 {
      %c0_30 = arith.constant 0 : index
      %c0_31 = arith.constant 0 : index
      %61 = vector.load %arg7[%c0_30, %c0_31] : memref<8x1xf32, #tpu.memory_space<vmem>>, vector<8x1xf32>
      %cst_32 = arith.constant dense<0.000000e+00> : vector<8xf32>
      %62 = vector.multi_reduction <add>, %43, %cst_32 [1] : vector<8x16xf32> to vector<8xf32>
      %63 = vector.shape_cast %62 : vector<8xf32> to vector<8x1xf32>
      %64 = arith.addf %61, %63 : vector<8x1xf32>
      %c0_33 = arith.constant 0 : index
      %c0_34 = arith.constant 0 : index
      %65 = vector.load %arg7[%c0_33, %c0_34] : memref<8x1xf32, #tpu.memory_space<vmem>>, vector<8x1xf32>
      tpu.vector_store %arg7[%c0_33, %c0_34], %64 {strides = array<i32>} : memref<8x1xf32, #tpu.memory_space<vmem>>, vector<8x1xf32>,
    } else {
    }
    %c0_i32_28 = arith.constant 0 : i32
    %58 = arith.cmpi eq, %arg1, %c0_i32_28 : i32
    %59 = arith.extui %58 : i1 to i32
    %c0_i32_29 = arith.constant 0 : i32
    %60 = arith.cmpi ne, %59, %c0_i32_29 : i32
    scf.if %60 {
      %c0_30 = arith.constant 0 : index
      %c0_31 = arith.constant 0 : index
      %61 = vector.load %arg7[%c0_30, %c0_31] : memref<8x1xf32, #tpu.memory_space<vmem>>, vector<8x1xf32>
      %cst_32 = arith.constant 9.99999993E-9 : f32
      %62 = vector.broadcast %cst_32 : f32 to vector<8x1xf32>
      %63 = arith.addf %61, %62 : vector<8x1xf32>
      %64 = math.log %63 : vector<8x1xf32>
      %c0_33 = arith.constant 0 : index
      %c0_34 = arith.constant 0 : index
      %65 = vector.load %arg8[%c0_33, %c0_34] : memref<8x1xf32, #tpu.memory_space<vmem>>, vector<8x1xf32>
      %c0_35 = arith.constant 0 : index
      %c0_36 = arith.constant 0 : index
      %66 = vector.load %arg9[%c0_35, %c0_36] : memref<8x1xf32, #tpu.memory_space<vmem>>, vector<8x1xf32>
      %67 = arith.mulf %66, %64 : vector<8x1xf32>
      %68 = arith.subf %65, %67 : vector<8x1xf32>
      %c0_37 = arith.constant 0 : index
      %c0_38 = arith.constant 0 : index
      %69 = vector.load %arg9[%c0_37, %c0_38] : memref<8x1xf32, #tpu.memory_space<vmem>>, vector<8x1xf32>
      %cst_39 = arith.constant 9.99999993E-9 : f32
      %70 = vector.broadcast %cst_39 : f32 to vector<8x1xf32>
      %71 = arith.addf %69, %70 : vector<8x1xf32>
      %72 = arith.divf %68, %71 : vector<8x1xf32>
      %c0_40 = arith.constant 0 : index
      %c0_41 = arith.constant 0 : index
      %73 = vector.load %arg6[%c0_40, %c0_41] : memref<8x1xf32, #tpu.memory_space<vmem>>, vector<8x1xf32>
      tpu.vector_store %arg6[%c0_40, %c0_41], %72 {strides = array<i32>} : memref<8x1xf32, #tpu.memory_space<vmem>>, vector<8x1xf32>,
    } else {
    }
    return
  }
  func.func @transform_0(%arg0: i32, %arg1: i32) -> (i32, i32) {
    %c0_i32 = arith.constant 0 : i32
    %c0_i32_0 = arith.constant 0 : i32
    return %arg0, %c0_i32 : i32, i32
  }
  func.func @transform_1(%arg0: i32, %arg1: i32) -> (i32, i32) {
    %c0_i32 = arith.constant 0 : i32
    %c0_i32_0 = arith.constant 0 : i32
    return %c0_i32, %arg1 : i32, i32
  }
  func.func @transform_2(%arg0: i32, %arg1: i32) -> (i32, i32) {
    %c0_i32 = arith.constant 0 : i32
    %c0_i32_0 = arith.constant 0 : i32
    return %arg0, %c0_i32 : i32, i32
  }
  func.func @transform_3(%arg0: i32, %arg1: i32) -> (i32, i32) {
    %c0_i32 = arith.constant 0 : i32
    %c0_i32_0 = arith.constant 0 : i32
    return %c0_i32, %arg1 : i32, i32
  }
  func.func @transform_4(%arg0: i32, %arg1: i32) -> (i32, i32) {
    %c0_i32 = arith.constant 0 : i32
    %c0_i32_0 = arith.constant 0 : i32
    return %arg0, %c0_i32 : i32, i32
  }
}

</mosaic_0001>

<bundles_post_ra>
// kernel: supcon_loss_soft_negative.1
= control target key start
LH: loop header
LB: loop body
LE: loop exit
PB: predicated region body
PF: predicated region fallthrough
CT: control target
= control target key end

     0   :  { %s610_s15 = smov 0   ;;  %s612_s16 = smov 0   ;;  %s706_s0 = inlined_call_operand.vmem [shape: f32[16,32], index: 0, kind: input, shape index: {}]   ;;  %s707_s1 = inlined_call_operand.vmem [shape: f32[32,16], index: 1, kind: input, shape index: {}]   ;;  %s708_s2 = inlined_call_operand.vmem [shape: s32[16,1], index: 2, kind: input, shape index: {}]   ;;  %s709_s3 = inlined_call_operand.vmem [shape: s32[1,16], index: 3, kind: input, shape index: {}]   ;;  %s710_s4 = inlined_call_operand.vmem [shape: f32[16,1], index: 4, kind: output, shape index: {}]  }
   0x1   :  { %s614_s17 = smov 0  }
   0x2 LB: > { %s26_s18 = sadd.s32 1, %s576_s16  ;;  %p512_p0 = scmp.ge.s32.totalorder %s580_s17, 1  ;;  %s580_s17 = sphi %s614_s17, %s14_s17   ;;  %s576_s16 = sphi %s612_s16, %s713_s16   ;;  %s572_s15 = sphi %s610_s15, %s712_s15  }
   0x3   : > { %p28_p1 = scmp.ge.s32.totalorder %s26_s18, 2  ;;  %p199_p2 = scmp.lt.s32.totalorder %s580_s17, 3 }
   0x5   : > { %s715_s18 = smov (%p28_p1, %s26_s18), 0  ;;  %p200_p3 = pnand %p512_p0, %p199_p2 }
   0x6   : > { %p234_p4 = scmp.lt.s32.totalorder (!%p200_p3), %s572_s15, 1  ;;  %s670_s20 = sshll.u32 (!%p200_p3), %s572_s15, 3 }
   0x7   : > { %203 = sbr.rel (%p200_p3) target bundleno = 553 (0x229), region = 36  ;;  %s346_s21 = sadd.s32 (!%p200_p3), 8, %s670_s20 }
   0x8   : > { %p345_p5 = scmp.lt.s32.totalorder (!%p200_p3), %s670_s20, 16  ;;  %p519_p6 = scmp.gt.s32.totalorder (!%p200_p3), %s346_s21, 0 }
   0xa   : > { %p674_p7 = pnand (!%p200_p3), %p519_p6, %p345_p5 }
   0xc   : > { %v265_v0 = vld [vmem:[%s707_s1 + $0x18] sm:$0xff]  ;;  %v264_v1 = vld [vmem:[%s707_s1 + $0x10] sm:$0xff]  ;;  %v582_v2 = vmov 0   ;;  %v263_v3 = vld [vmem:[%s707_s1 + $0x8] sm:$0xff]  ;;  %s235_s25 = scalar_select %p234_p4, %s572_s15, 1  ;;  %vm266_vm0 = vcmask 261120  }
   0xd   : > { %282 = vmatpush.msra.mxu0 %v265_v0  ;;  %549 = vset.pattern.permute.xlu0 %v582_v2  ;;  %v262_v4 = vld [vmem:[%s707_s1] sm:$0xff]  ;;  %vm583_vm2 = vmmov 1   ;;  %vm257_vm4 = vcmask 7168   ;;  %v584_v9 = vmov 0.0   ;;  %vm311_vm11 = vcmask 130048  }
   0xe   : > { %550 = vset.pattern.permute.xlu2 %v582_v2  ;;  %s644_s28 = sshll.u32 %s235_s25, 3  ;;  %258 = vst.msk [vmem:[#allocation2] sm:$0xff] %vm257_vm4, %v584_v9  ;;  %v291_v10 = vld [vmem:[%s709_s3] sm:$0x1] }
   0xf   : > { %283 = vmatpush.msra.mxu0 %v264_v1  ;;  %s237_s5 = scalar_lea.vmem %s706_s0, %s644_s28  ;;  %s252_s8 = scalar_lea.vmem %s710_s4, %s644_s28  ;;  %259 = vst.msk [vmem:[#allocation3] sm:$0xff] %vm257_vm4, %v584_v9  ;;  %vm293_vm5 = vcmp.ne.s32.totalorder %v291_v10, 4294967295  ;;  %v551_v14 = vld [vmem:[%s709_s3] ss:$0 sm:$0xff] }
  0x10   : > { %v261_v5 = vld [vmem:[%s237_s5] sm:$0xff]  ;;  %s245_s11 = scalar_lea.vmem %s708_s2, %s644_s28  ;;  %260 = vst.msk [vmem:[#allocation4] sm:$0xff] %vm257_vm4, %v584_v9  ;;  %v304_v11 = vsel %vm293_vm5, 1, %v582_v2  ;;  %vm327_vm6 = vmxor %vm293_vm5, %vm583_vm2 }
  0x11   : > { %284 = vmatpush.msra.mxu0 %v263_v3  ;;  %v290_v6 = vld [vmem:[%s245_s11] sm:$0xff]  ;;  %v305_v13 = vperm.slane %v304_v11, 0  ;;  %v333_v15 = vsel %vm327_vm6, 1, %v582_v2 }
  0x12   : > { %vm292_vm1 = vcmp.ne.s32.totalorder %v290_v6, 4294967295  ;;  %v334_v17 = vperm.slane %v333_v15, 0 }
  0x13   : > { %285 = vmatpush.msra.mxu0 %v262_v4  ;;  %v299_v7 = vsel %vm292_vm1, 1, %v582_v2  ;;  %vm326_vm3 = vmxor %vm292_vm1, %vm583_vm2  ;;  %vm306_vm7 = vcmp.eq.s32.totalorder %v305_v13, 1 }
  0x14   : > { %516 = vmatmul.msk.f32.vlgmr.msra.gmra.mxu0 %vm266_vm0, %v261_v5  ;;  %301 = vperm.xlu0 %549, %v299_v7   ;;  %v328_v8 = vsel %vm326_vm3, 1, %v582_v2  ;;  %vm335_vm13 = vcmp.eq.s32.totalorder %v334_v17, 1 }
  0x15   : > { %330 = vperm.xlu2 %550, %v328_v8  }
  0x16   : > { %v309_v29 = vld [vmem:[#allocation3] sm:$0xff] }
  0x17   : > { %v318_v32 = vld [vmem:[#allocation4] sm:$0xff] }
  0x1c   : > { %295 = vperm.xlu0 %549, %v290_v6  }
  0x6f   : > { %v331_v18 = vpop.permute.xlu2 %330 }
  0x70   : > { %vm332_vm14 = vcmp.eq.s32.totalorder %v331_v18, 1 }
  0x71   : > { %vm336_vm15 = vmor %vm332_vm14, %vm335_vm13 }
  0x86   : > { %v302_v12 = vpop.permute.xlu0 %301 }
  0x87   : > { %vm303_vm8 = vcmp.eq.s32.totalorder %v302_v12, 1 }
  0x88   : > { %vm307_vm9 = vmand %vm303_vm8, %vm306_vm7 }
  0x8e   : > { %v296_v16 = vpop.permute.xlu0 %295 }
  0x8f   : > { %vm298_vm10 = vcmp.eq.s32.totalorder %v296_v16, %v551_v14 }
  0x90   : > { %vm308_vm12 = vmand %vm298_vm10, %vm307_vm9 }
  0x91   : > { %v287_v19 = vpop.f32.mrf.mxu0  ;;  %v517_v24 = vsel %vm308_vm12, 1.0, %v584_v9 }
  0x92   : > { %v337_v20 = vmul.f32 1.442695, %v287_v19  ;;  %v310_v21 = vsel %vm308_vm12, %v287_v19, 0.0  ;;  %v339_v23 = vsub.f32 1.0, %v287_v19  ;;  %v321_v28 = vsel %vm311_vm11, %v517_v24, 0.0 }
  0x93   : > { %v312_v22 = vsel %vm311_vm11, %v310_v21, 0.0 }
  0x94   : > { %552 = vpow2.f32 %v337_v20  ;;  %313 = vadd.xlane.f32.xlu1 %v312_v22  ;;  %v340_v26 = vsel %vm336_vm15, %v339_v23, 1.0 }
  0x9a   : > { %v553_v25 = vpop.eup %552 }
  0x9b   : > { %v341_v27 = vmul.f32 %v553_v25, %v340_v26 }
  0x9c   : > { %322 = vadd.xlane.f32.xlu1 %v321_v28 }
 0x107   : > { %v314_v30 = vpop.xlane.xlu1 %313 }
 0x108   : > { %v315_v31 = vadd.f32 %v314_v30, %v309_v29 }
 0x10a   : > { %317 = vst.msk [vmem:[#allocation3] sm:$0xff] %vm257_vm4, %v315_v31 }
 0x10e   : > { %351 = sbr.rel (%p674_p7) target bundleno = 403 (0x193), region = 44 }
 0x10f   : > { %v323_v33 = vpop.xlane.xlu1 %322 }
 0x110   : > { %v324_v34 = vadd.f32 %v323_v33, %v318_v32 }
 0x112   : > { %325 = vst.msk [vmem:[#allocation4] sm:$0xff] %vm257_vm4, %v324_v34 }
 0x113   : > { %v352_v35 = vlaneseq  ;;  %v354_v36 = vstv %s670_s20  ;;  %v360_v42 = vld [vmem:[#allocation2] sm:$0xff] }
 0x115   : > { %v353_v37 = vshrl.u32 %v352_v35, 7  ;;  %v357_v38 = vand.u32 127, %v352_v35 }
 0x117   : > { %v355_v39 = vadd.s32 %v354_v36, %v353_v37 }
 0x119   : > { %vm361_vm0 = vcmp.ne.s32.totalorder %v355_v39, %v357_v38 }
 0x11a   : > { %v362_v40 = vsel %vm361_vm0, %v341_v27, 0.0 }
 0x11b   : > { %v363_v41 = vsel %vm311_vm11, %v362_v40, 0.0 }
 0x11c   : > { %364 = vadd.xlane.f32.xlu0 %v363_v41 }
 0x18f   : > { %v365_v43 = vpop.xlane.xlu0 %364 }
 0x190   : > { %v366_v44 = vadd.f32 %v365_v43, %v360_v42 }
 0x192   : > { %367 = vst.msk [vmem:[#allocation2] sm:$0xff] %vm257_vm4, %v366_v44 }
 0x193 PF: > { %370 = sbr.rel (!%p674_p7) target bundleno = 523 (0x20b), region = 48  ;;  %v372_v45 = vsel (%p674_p7), %vm311_vm11, %v341_v27, 0.0 }
 0x194   : > { %373 = vadd.xlane.f32.xlu0 (%p674_p7), %v372_v45 }
 0x199   : > { %v371_v46 = vld [vmem:[#allocation2] sm:$0xff] }
 0x207   : > { %v374_v47 = vpop.xlane.xlu0 %373 }
 0x208   : > { %v375_v48 = vadd.f32 %v374_v47, %v371_v46 }
 0x20a   : > { %376 = vst.msk [vmem:[#allocation2] sm:$0xff] %vm257_vm4, %v375_v48 }
 0x20b PF: > { %v384_v61 = vld [vmem:[#allocation3] sm:$0xff] }
 0x20c   : > { %v385_v50 = vld [vmem:[#allocation4] sm:$0xff] }
 0x20d   : > { %v388_v52 = vadd.f32 1e-08, %v385_v50 }
 0x20f   : > { %vm394_vm1 = vweird.f32 %v388_v52  ;;  %v400_v57 = vand.u32 2147483648, %v388_v52  ;;  %v398_v60 = vand.u32 2147483647, %v388_v52 }
 0x211   : > { %v380_v49 = vld [vmem:[#allocation2] sm:$0xff]  ;;  %v401_v63 = vor.u32 1.1754944e-38, %v400_v57  ;;  %vm399_vm5 = vcmp.eq.f32.partialorder %v398_v60, 8.507059e+37 }
 0x212   : > { %v381_v51 = vadd.f32 1e-08, %v380_v49 }
 0x214   : > { %554 = vlog2.f32 %v381_v51 }
 0x215   : > { %556 = vrcp.f32 %v388_v52 }
 0x21a   : > { %v555_v53 = vpop.eup %554 }
 0x21b   : > { %v557_v54 = vpop.eup %556  ;;  %v383_v55 = vmul.f32 0.6931472, %v555_v53 }
 0x21c   : > { %v390_v56 = vmul.f32 %v557_v54, %v388_v52  ;;  %vm395_vm2 = vweird.f32 %v557_v54 }
 0x21d   : > { %v386_v58 = vmul.f32 %v385_v50, %v383_v55  ;;  %vm396_vm3 = vmor %vm394_vm1, %vm395_vm2 }
 0x21e   : > { %v391_v59 = vsub.f32 1.0, %v390_v56 }
 0x21f   : > { %v387_v0 = vsub.f32 %v384_v61, %v386_v58 }
 0x220   : > { %v392_v62 = vmul.f32 %v557_v54, %v391_v59 }
 0x222   : > { %v393_v1 = vadd.f32 %v557_v54, %v392_v62 }
 0x224   : > { %v397_v2 = vsel %vm396_vm3, %v557_v54, %v393_v1 }
 0x225   : > { %v402_v3 = vsel %vm399_vm5, %v401_v63, %v397_v2 }
 0x226   : > { %v403_v4 = vmul.f32 %v402_v3, %v387_v0 }
 0x228   : > { %404 = vst.msk [vmem:[%s252_s8] sm:$0xff] %vm257_vm4, %v403_v4 }
 0x229 PF: > { %s14_s17 = sadd.s32 1, %s580_s17   ;;  %s712_s15 = smov %s576_s16 }
 0x22a   : > { %p11_p8 = scmp.ge.s32.totalorder %s14_s17, 4   ;;  %s713_s16 = smov %s715_s18 }
 0x22c   :  { %13 = sbr.rel (!%p11_p8) target bundleno = 2 (0x2), region = 91 }

</bundles_post_ra>
